<compile_context>
chip_gen: v6e
topology: v6e:2x2x1
jax: 0.10.0
libtpu: 0.0.40
codegen_flags: <defaults>
</compile_context>

<pallas_src>
import jax
import jax.numpy as jnp
from jax import lax
from jax.experimental import pallas as pl
from jax.experimental.pallas import tpu as pltpu


def _round_up(x, m):
    return ((x + m - 1) // m) * m


def _linear_constraint_kernel(x_ref, w_ref, b_ref, lo_ref, hi_ref, o_ref, acc_ref):
    k = pl.program_id(2)

    @pl.when(k == 0)
    def _():
        acc_ref[...] = jnp.zeros_like(acc_ref)

    # Per-column clamp, broadcast over the D_out rows of this weight tile (VPU).
    w = jnp.minimum(jnp.maximum(w_ref[...], lo_ref[...]), hi_ref[...])

    # (tm, tk) contracted with (tn, tk) on the tk axis -> (tm, tn).
    # dot_general avoids materializing a transpose of the weight tile.
    acc_ref[...] += lax.dot_general(
        x_ref[...], w,
        dimension_numbers=(((1,), (1,)), ((), ())),
        preferred_element_type=jnp.float32)

    @pl.when(k == pl.num_programs(2) - 1)
    def _():
        o_ref[...] = (acc_ref[...] + b_ref[...]).astype(o_ref.dtype)


def linear_constraint_forward(x, weight, bias, pos_mask=None, neg_mask=None,
                              *, tm_target=256, tn_target=256, tk_target=512):
    """x: (B, D_in) f32; weight: (D_out, D_in) f32 (nn.Linear layout);
    bias: (D_out,) f32 or None; pos_mask/neg_mask: (D_in,) {0,1} or None."""
    B, D_in = x.shape
    D_out = weight.shape[0]

    # Tile sizes: 8/128-granular, capped by the (padded) problem size.
    tm = min(tm_target, _round_up(B, 8))
    tn = min(tn_target, _round_up(D_out, 128))
    tk = min(tk_target, _round_up(D_in, 128))

    B_pad = _round_up(B, tm)
    N_pad = _round_up(D_out, tn)
    K_pad = _round_up(D_in, tk)

    # Zero-pad: padded x cols / weight rows+cols contribute 0 to the matmul,
    # padded output rows/cols are sliced off below.
    x_p = jnp.pad(x.astype(jnp.float32), ((0, B_pad - B), (0, K_pad - D_in)))
    w_p = jnp.pad(weight.astype(jnp.float32),
                  ((0, N_pad - D_out), (0, K_pad - D_in)))
    if bias is None:
        bias = jnp.zeros((D_out,), jnp.float32)
    b_p = jnp.pad(bias.astype(jnp.float32), (0, N_pad - D_out)).reshape(1, N_pad)

    if pos_mask is None:
        pos_mask = jnp.zeros((D_in,), jnp.float32)
    if neg_mask is None:
        neg_mask = jnp.zeros((D_in,), jnp.float32)
    pos_p = jnp.pad(pos_mask.astype(jnp.float32), (0, K_pad - D_in))
    neg_p = jnp.pad(neg_mask.astype(jnp.float32), (0, K_pad - D_in))
    # Fold both masks into clamp bounds: 2 VPU ops in-kernel instead of 6.
    lo = jnp.where(pos_p > 0.5, 0.0, -jnp.inf).reshape(1, K_pad).astype(jnp.float32)
    hi = jnp.where(neg_p > 0.5, 0.0, jnp.inf).reshape(1, K_pad).astype(jnp.float32)

    grid = (B_pad // tm, N_pad // tn, K_pad // tk)

    # Double-buffered inputs/output + f32 accumulator; generous 2x headroom,
    # capped well below v7x's 64 MiB physical VMEM.
    vmem_need = (2 * (tm * tk + tn * tk + tm * tn + tn + 2 * tk) + tm * tn) * 4
    vmem_limit = int(min(max(2 * vmem_need, 8 << 20), 48 << 20))

    # TODO(synk): optional bf16 x/weight path (f32 accumulation) for v6e/v7x MXU
    # throughput; kept f32 here to match the PyTorch module's numerics exactly.
    out_p = pl.pallas_call(
        _linear_constraint_kernel,
        out_shape=jax.ShapeDtypeStruct((B_pad, N_pad), jnp.float32),
        grid=grid,
        in_specs=[
            pl.BlockSpec((tm, tk), lambda i, j, k: (i, k)),   # x
            pl.BlockSpec((tn, tk), lambda i, j, k: (j, k)),   # weight
            pl.BlockSpec((1, tn), lambda i, j, k: (0, j)),    # bias
            pl.BlockSpec((1, tk), lambda i, j, k: (0, k)),    # lo
            pl.BlockSpec((1, tk), lambda i, j, k: (0, k)),    # hi
        ],
        out_specs=pl.BlockSpec((tm, tn), lambda i, j, k: (i, j)),
        scratch_shapes=[pltpu.VMEM((tm, tn), jnp.float32)],
        compiler_params=pltpu.CompilerParams(
            dimension_semantics=("parallel", "parallel", "arbitrary"),
            vmem_limit_bytes=vmem_limit),
        cost_estimate=pl.CostEstimate(
            flops=2 * B_pad * K_pad * N_pad,
            bytes_accessed=4 * (B_pad * K_pad + N_pad * K_pad + B_pad * N_pad),
            transcendentals=0),
    )(x_p, w_p, b_p, lo, hi)

    return out_p[:B, :D_out]


if __name__ == "__main__":
    # Small shapes implied by the module: a plain constrained Linear layer.
    batch, dim_input, dim_output = 8, 32, 8
    positive_indice = jnp.array([0, 1, 2, 3], dtype=jnp.int32)
    negative_indice = jnp.array([10, 11, 12], dtype=jnp.int32)

    key = jax.random.PRNGKey(0)
    kx, kw, kb = jax.random.split(key, 3)

    x = jax.random.normal(kx, (batch, dim_input), dtype=jnp.float32)
    # Deterministic parameter init (synthetic, not a checkpoint load).
    weight = jax.random.normal(kw, (dim_output, dim_input), dtype=jnp.float32) * 0.1
    bias = jax.random.normal(kb, (dim_output,), dtype=jnp.float32) * 0.01

    pos_mask = jnp.zeros((dim_input,), jnp.float32).at[positive_indice].set(1.0)
    neg_mask = jnp.zeros((dim_input,), jnp.float32).at[negative_indice].set(1.0)

    out = linear_constraint_forward(x, weight, bias, pos_mask, neg_mask)
    out = jax.block_until_ready(out)

    # Pure-JAX reference of the exact PyTorch forward semantics (silent check).
    w_ref = weight
    w_ref = w_ref.at[:, positive_indice].set(
        jnp.maximum(w_ref[:, positive_indice], 0.0))
    w_ref = w_ref.at[:, negative_indice].set(
        jnp.minimum(w_ref[:, negative_indice], 0.0))
    ref = x @ w_ref.T + bias
    assert jnp.allclose(out, ref, atol=1e-5, rtol=1e-5)

    print("KERNEL_OK")
</pallas_src>

<mosaic_0001>
module attributes {stable_mosaic.version = 11 : i64} {
  func.func @_linear_constraint_kernel(%arg0: i32, %arg1: i32, %arg2: i32, %arg3: memref<8x128xf32, #tpu.memory_space<vmem>>, %arg4: memref<128x128xf32, #tpu.memory_space<vmem>>, %arg5: memref<1x128xf32, #tpu.memory_space<vmem>>, %arg6: memref<1x128xf32, #tpu.memory_space<vmem>>, %arg7: memref<1x128xf32, #tpu.memory_space<vmem>>, %arg8: memref<8x128xf32, #tpu.memory_space<vmem>>, %arg9: memref<8x128xf32, #tpu.memory_space<vmem>>) attributes {dimension_semantics = [#tpu.dimension_semantics<parallel>, #tpu.dimension_semantics<parallel>, #tpu.dimension_semantics<arbitrary>], iteration_bounds = array<i64: 1, 1, 1>, scalar_prefetch = 0 : i64, scratch_operands = 1 : i64, tpu.core_type = #tpu.core_type<tc>, window_params = [{transform_indices = @transform_0, window_bounds = array<i64: 8, 128>}, {transform_indices = @transform_1, window_bounds = array<i64: 128, 128>}, {transform_indices = @transform_2, window_bounds = array<i64: 1, 128>}, {transform_indices = @transform_3, window_bounds = array<i64: 1, 128>}, {transform_indices = @transform_4, window_bounds = array<i64: 1, 128>}, {transform_indices = @transform_5, window_bounds = array<i64: 8, 128>}]} {
    %c0_i32 = arith.constant 0 : i32
    %0 = arith.cmpi eq, %arg2, %c0_i32 : i32
    %1 = arith.extui %0 : i1 to i32
    %c0_i32_0 = arith.constant 0 : i32
    %2 = arith.cmpi ne, %1, %c0_i32_0 : i32
    scf.if %2 {
      %cst_14 = arith.constant 0.000000e+00 : f32
      %18 = vector.broadcast %cst_14 : f32 to vector<8x128xf32>
      %c0_15 = arith.constant 0 : index
      %c0_16 = arith.constant 0 : index
      %19 = vector.load %arg9[%c0_15, %c0_16] : memref<8x128xf32, #tpu.memory_space<vmem>>, vector<8x128xf32>
      tpu.vector_store %arg9[%c0_15, %c0_16], %18 {strides = array<i32>} : memref<8x128xf32, #tpu.memory_space<vmem>>, vector<8x128xf32>,
    } else {
    }
    %c0 = arith.constant 0 : index
    %c0_1 = arith.constant 0 : index
    %3 = vector.load %arg4[%c0, %c0_1] : memref<128x128xf32, #tpu.memory_space<vmem>>, vector<128x128xf32>
    %c0_2 = arith.constant 0 : index
    %c0_3 = arith.constant 0 : index
    %4 = vector.load %arg6[%c0_2, %c0_3] : memref<1x128xf32, #tpu.memory_space<vmem>>, vector<1x128xf32>
    %5 = vector.broadcast %4 : vector<1x128xf32> to vector<128x128xf32>
    %6 = arith.maximumf %3, %5 : vector<128x128xf32>
    %c0_4 = arith.constant 0 : index
    %c0_5 = arith.constant 0 : index
    %7 = vector.load %arg7[%c0_4, %c0_5] : memref<1x128xf32, #tpu.memory_space<vmem>>, vector<1x128xf32>
    %8 = vector.broadcast %7 : vector<1x128xf32> to vector<128x128xf32>
    %9 = arith.minimumf %6, %8 : vector<128x128xf32>
    %c0_6 = arith.constant 0 : index
    %c0_7 = arith.constant 0 : index
    %10 = vector.load %arg9[%c0_6, %c0_7] : memref<8x128xf32, #tpu.memory_space<vmem>>, vector<8x128xf32>
    %c0_8 = arith.constant 0 : index
    %c0_9 = arith.constant 0 : index
    %11 = vector.load %arg3[%c0_8, %c0_9] : memref<8x128xf32, #tpu.memory_space<vmem>>, vector<8x128xf32>
    %cst = arith.constant dense<0.000000e+00> : vector<8x128xf32>
    %12 = tpu.matmul %11, %9, %cst {dimension_numbers = #tpu.dot_dimension_numbers<[1], [1], [0], [0], [0, 0, 1, 0], [], []>} : vector<8x128xf32>, vector<128x128xf32>, vector<8x128xf32> -> vector<8x128xf32>
    %13 = arith.addf %10, %12 : vector<8x128xf32>
    %c0_10 = arith.constant 0 : index
    %c0_11 = arith.constant 0 : index
    %14 = vector.load %arg9[%c0_10, %c0_11] : memref<8x128xf32, #tpu.memory_space<vmem>>, vector<8x128xf32>
    tpu.vector_store %arg9[%c0_10, %c0_11], %13 {strides = array<i32>} : memref<8x128xf32, #tpu.memory_space<vmem>>, vector<8x128xf32>,
    %c0_i32_12 = arith.constant 0 : i32
    %15 = arith.cmpi eq, %arg2, %c0_i32_12 : i32
    %16 = arith.extui %15 : i1 to i32
    %c0_i32_13 = arith.constant 0 : i32
    %17 = arith.cmpi ne, %16, %c0_i32_13 : i32
    scf.if %17 {
      %c0_14 = arith.constant 0 : index
      %c0_15 = arith.constant 0 : index
      %18 = vector.load %arg9[%c0_14, %c0_15] : memref<8x128xf32, #tpu.memory_space<vmem>>, vector<8x128xf32>
      %c0_16 = arith.constant 0 : index
      %c0_17 = arith.constant 0 : index
      %19 = vector.load %arg5[%c0_16, %c0_17] : memref<1x128xf32, #tpu.memory_space<vmem>>, vector<1x128xf32>
      %20 = vector.broadcast %19 : vector<1x128xf32> to vector<8x128xf32>
      %21 = arith.addf %18, %20 : vector<8x128xf32>
      %c0_18 = arith.constant 0 : index
      %c0_19 = arith.constant 0 : index
      %22 = vector.load %arg8[%c0_18, %c0_19] : memref<8x128xf32, #tpu.memory_space<vmem>>, vector<8x128xf32>
      tpu.vector_store %arg8[%c0_18, %c0_19], %21 {strides = array<i32>} : memref<8x128xf32, #tpu.memory_space<vmem>>, vector<8x128xf32>,
    } else {
    }
    return
  }
  func.func @transform_0(%arg0: i32, %arg1: i32, %arg2: i32) -> (i32, i32) {
    %c0_i32 = arith.constant 0 : i32
    return %arg0, %arg2 : i32, i32
  }
  func.func @transform_1(%arg0: i32, %arg1: i32, %arg2: i32) -> (i32, i32) {
    %c0_i32 = arith.constant 0 : i32
    return %arg1, %arg2 : i32, i32
  }
  func.func @transform_2(%arg0: i32, %arg1: i32, %arg2: i32) -> (i32, i32) {
    %c0_i32 = arith.constant 0 : i32
    %c0_i32_0 = arith.constant 0 : i32
    return %c0_i32, %arg1 : i32, i32
  }
  func.func @transform_3(%arg0: i32, %arg1: i32, %arg2: i32) -> (i32, i32) {
    %c0_i32 = arith.constant 0 : i32
    %c0_i32_0 = arith.constant 0 : i32
    return %c0_i32, %arg2 : i32, i32
  }
  func.func @transform_4(%arg0: i32, %arg1: i32, %arg2: i32) -> (i32, i32) {
    %c0_i32 = arith.constant 0 : i32
    %c0_i32_0 = arith.constant 0 : i32
    return %c0_i32, %arg2 : i32, i32
  }
  func.func @transform_5(%arg0: i32, %arg1: i32, %arg2: i32) -> (i32, i32) {
    %c0_i32 = arith.constant 0 : i32
    return %arg0, %arg1 : i32, i32
  }
}

</mosaic_0001>

<bundles_post_ra>
// kernel: tpu_custom_call.1
= control target key start
LH: loop header
LB: loop body
LE: loop exit
PB: predicated region body
PF: predicated region fallthrough
CT: control target
= control target key end

     0   :  { %10 = vsyncpa [#allocation4], 0  ;;  %s453_s0 = inlined_call_operand.hbm [shape: f32[8,128], index: 0, kind: input, shape index: {}]   ;;  %s454_s1 = inlined_call_operand.hbm [shape: f32[128,128], index: 1, kind: input, shape index: {}]   ;;  %s455_s2 = inlined_call_operand.vmem [shape: f32[1,128], index: 2, kind: input, shape index: {}]   ;;  %s456_s3 = inlined_call_operand.vmem [shape: f32[1,128], index: 3, kind: input, shape index: {}]   ;;  %s457_s4 = inlined_call_operand.vmem [shape: f32[1,128], index: 4, kind: input, shape index: {}]   ;;  %s458_s5 = inlined_call_operand.hbm [shape: f32[8,128], index: 5, kind: output, shape index: {}]  }
   0x1   :  { %11 = vsyncpa [#allocation7], 0 }
   0x2   :  { %12 = vsyncpa [#allocation5], 0  ;;  %s345_s18 = smov [#allocation3]   ;;  %s346_s20 = smov [#allocation6]  }
   0x3   :  { %s19_s19 = sshll.u32 %s345_s18, 4  ;;  %s28_s21 = sshll.u32 %s346_s20, 4  ;;  %s20_s19 = int_to_ptr.vmem [resolvable:$true] %s19_s19  ;;  %s29_s21 = int_to_ptr.vmem [resolvable:$true] %s28_s21 }
   0x4   :  { %s287_s22 = scalar_lea.vmem %s20_s19, 128  ;;  %p292_p1 = scmp.lt.s32.totalorder %s20_s19, %s20_s19 }
   0x5   :  { %p288_p0 = scmp.ne.s32.totalorder %s20_s19, %s287_s22  ;;  %p293_p2 = scmp.lt.s32.totalorder %s287_s22, %s287_s22 }
   0x7   :  { %p294_p3 = por %p293_p2, %p292_p1 }
   0x9   :  { %p295_p4 = pnand %p294_p3, %p288_p0 }
   0xb   :  { %298 = shalt.err (!%p295_p4)
}
   0xc   :  { %22 = dma.hbm_to_vmem [thread:$0]  %s453_s0, 128, %s20_s19, [#allocation4]  }
   0xd   :  { %s307_s25 = scalar_lea.vmem %s29_s21, 2048  ;;  %p312_p6 = scmp.lt.s32.totalorder %s29_s21, %s29_s21 }
   0xe   :  { %p308_p5 = scmp.ne.s32.totalorder %s29_s21, %s307_s25  ;;  %p313_p7 = scmp.lt.s32.totalorder %s307_s25, %s307_s25 }
  0x10   :  { %p314_p8 = por %p313_p7, %p312_p6 }
  0x12   :  { %p315_p9 = pnand %p314_p8, %p308_p5 }
  0x14   :  { %318 = shalt.err (!%p315_p9)
}
  0x15   :  { %s347_s26 = smov 128   ;;  %s348_s27 = smov 8  }
  0x16   :  { %34 = dma.hbm_to_vmem [thread:$0]  %s454_s1, 2048, %s29_s21, [#allocation7], %s347_s26, %s347_s26, %s348_s27  }
  0x17   :  { %339 = dma.done.wait [#allocation4], 128  }
  0x18   :  { %340 = vsyncadd [#allocation4], 4294967168 }
  0x19   :  { %341 = dma.done.wait [#allocation7], 2048  }
  0x1a   :  { %342 = vsyncadd [#allocation7], 4294965248  ;;  %v349_v0 = vmov 0.0   ;;  %vm350_vm0 = vmmov 0   ;;  %v67_v1 = vld [vmem:[#allocation6 + $0x78] sm:$0xff]  ;;  %v66_v5 = vld [vmem:[#allocation6 + $0x70] sm:$0xff] }
  0x1b   :  { %237 = vmatprep.subr.mxu0 %v349_v0  ;;  %269 = vmatprep.mubr.msk.f32.mxu0 %vm350_vm0, %v349_v0  ;;  %v393_v2 = vld [vmem:[%s456_s3] ss:$0 sm:$0xff]  ;;  %v65_v7 = vld [vmem:[#allocation6 + $0x68] sm:$0xff]  ;;  %v64_v11 = vld [vmem:[#allocation6 + $0x60] sm:$0xff] }
  0x1c   :  { %v398_v3 = vld [vmem:[%s457_s4] ss:$0 sm:$0xff]  ;;  %v90_v4 = vmax.f32 %v67_v1, %v393_v2  ;;  %v89_v6 = vmax.f32 %v66_v5, %v393_v2  ;;  %v88_v10 = vmax.f32 %v65_v7, %v393_v2  ;;  %v87_v13 = vmax.f32 %v64_v11, %v393_v2  ;;  %v62_v17 = vld [vmem:[#allocation6 + $0x50] sm:$0xff]  ;;  %v61_v20 = vld [vmem:[#allocation6 + $0x48] sm:$0xff]  ;;  %s351_s4 = smov [#allocation8]  }
  0x1d   :  { %v63_v14 = vld [vmem:[#allocation6 + $0x58] sm:$0xff]  ;;  %v85_v19 = vmax.f32 %v62_v17, %v393_v2  ;;  %v84_v22 = vmax.f32 %v61_v20, %v393_v2  ;;  %v60_v23 = vld [vmem:[#allocation6 + $0x40] sm:$0xff]  ;;  %v58_v29 = vld [vmem:[#allocation6 + $0x30] sm:$0xff]  ;;  %s207_s8 = sshll.u32 %s351_s4, 4  ;;  %s208_s8 = int_to_ptr.vmem [resolvable:$true] %s207_s8 }
  0x1e   :  { %v113_v8 = vmin.f32 %v90_v4, %v398_v3  ;;  %v112_v9 = vmin.f32 %v89_v6, %v398_v3  ;;  %v111_v12 = vmin.f32 %v88_v10, %v398_v3  ;;  %v110_v15 = vmin.f32 %v87_v13, %v398_v3  ;;  %v59_v26 = vld [vmem:[#allocation6 + $0x38] sm:$0xff]  ;;  %v57_v32 = vld [vmem:[#allocation6 + $0x28] sm:$0xff]  ;;  %v56_v35 = vld [vmem:[#allocation6 + $0x20] sm:$0xff]  ;;  %s319_s9 = scalar_lea.vmem %s208_s8, 128  ;;  %p324_p11 = scmp.lt.s32.totalorder %s208_s8, %s208_s8 }
  0x1f   :  { %v86_v16 = vmax.f32 %v63_v14, %v393_v2  ;;  %v108_v21 = vmin.f32 %v85_v19, %v398_v3  ;;  %v107_v24 = vmin.f32 %v84_v22, %v398_v3  ;;  %v83_v25 = vmax.f32 %v60_v23, %v393_v2  ;;  %v55_v38 = vld [vmem:[#allocation6 + $0x18] sm:$0xff]  ;;  %v54_v41 = vld [vmem:[#allocation6 + $0x10] sm:$0xff]  ;;  %v53_v44 = vld [vmem:[#allocation6 + $0x8] sm:$0xff]  ;;  %p320_p10 = scmp.ne.s32.totalorder %s208_s8, %s319_s9  ;;  %p325_p12 = scmp.lt.s32.totalorder %s319_s9, %s319_s9 }
  0x20   :  { %238 = vmatpush3.xpose.msra.mxu0 %v113_v8  ;;  %v82_v28 = vmax.f32 %v59_v26, %v393_v2  ;;  %v81_v31 = vmax.f32 %v58_v29, %v393_v2  ;;  %v80_v34 = vmax.f32 %v57_v32, %v393_v2  ;;  %v79_v37 = vmax.f32 %v56_v35, %v393_v2  ;;  %v52_v47 = vld [vmem:[#allocation6] sm:$0xff]  ;;  %v115_v51 = vld [vmem:[#allocation3] sm:$0xff] }
  0x21   :  { %239 = vmatprep.subr.mxu0 %v349_v0  ;;  %v109_v18 = vmin.f32 %v86_v16, %v398_v3  ;;  %v106_v27 = vmin.f32 %v83_v25, %v398_v3  ;;  %v78_v40 = vmax.f32 %v55_v38, %v393_v2  ;;  %v77_v43 = vmax.f32 %v54_v41, %v393_v2  ;;  %v219_v52 = vld [vmem:[%s455_s2] ss:$0 sm:$0xff]  ;;  %p326_p13 = por %p325_p12, %p324_p11 }
  0x22   :  { %v105_v30 = vmin.f32 %v82_v28, %v398_v3  ;;  %v104_v33 = vmin.f32 %v81_v31, %v398_v3  ;;  %v103_v36 = vmin.f32 %v80_v34, %v398_v3  ;;  %v102_v39 = vmin.f32 %v79_v37, %v398_v3 }
  0x23   :  { %v101_v42 = vmin.f32 %v78_v40, %v398_v3  ;;  %v100_v45 = vmin.f32 %v77_v43, %v398_v3  ;;  %v76_v46 = vmax.f32 %v53_v44, %v393_v2  ;;  %v75_v49 = vmax.f32 %v52_v47, %v393_v2  ;;  %p327_p0 = pnand %p326_p13, %p320_p10 }
  0x24   :  { %240 = vmatpush3.xpose.msra.mxu0 %v112_v9 }
  0x25   :  { %241 = vmatprep.subr.mxu0 %v349_v0  ;;  %v99_v48 = vmin.f32 %v76_v46, %v398_v3  ;;  %v98_v50 = vmin.f32 %v75_v49, %v398_v3 }
  0x28   :  { %242 = vmatpush3.xpose.msra.mxu0 %v111_v12 }
  0x29   :  { %243 = vmatprep.subr.mxu0 %v349_v0 }
  0x2c   :  { %244 = vmatpush3.xpose.msra.mxu0 %v110_v15 }
  0x2d   :  { %245 = vmatprep.subr.mxu0 %v349_v0 }
  0x30   :  { %246 = vmatpush3.xpose.msra.mxu0 %v109_v18 }
  0x31   :  { %247 = vmatprep.subr.mxu0 %v349_v0 }
  0x34   :  { %248 = vmatpush3.xpose.msra.mxu0 %v108_v21 }
  0x35   :  { %249 = vmatprep.subr.mxu0 %v349_v0 }
  0x38   :  { %250 = vmatpush3.xpose.msra.mxu0 %v107_v24 }
  0x39   :  { %251 = vmatprep.subr.mxu0 %v349_v0 }
  0x3c   :  { %252 = vmatpush3.xpose.msra.mxu0 %v106_v27 }
  0x3d   :  { %253 = vmatprep.subr.mxu0 %v349_v0 }
  0x40   :  { %254 = vmatpush3.xpose.msra.mxu0 %v105_v30 }
  0x41   :  { %255 = vmatprep.subr.mxu0 %v349_v0 }
  0x44   :  { %256 = vmatpush3.xpose.msra.mxu0 %v104_v33 }
  0x45   :  { %257 = vmatprep.subr.mxu0 %v349_v0 }
  0x48   :  { %258 = vmatpush3.xpose.msra.mxu0 %v103_v36 }
  0x49   :  { %259 = vmatprep.subr.mxu0 %v349_v0 }
  0x4c   :  { %260 = vmatpush3.xpose.msra.mxu0 %v102_v39 }
  0x4d   :  { %261 = vmatprep.subr.mxu0 %v349_v0 }
  0x50   :  { %262 = vmatpush3.xpose.msra.mxu0 %v101_v42 }
  0x51   :  { %263 = vmatprep.subr.mxu0 %v349_v0 }
  0x54   :  { %264 = vmatpush3.xpose.msra.mxu0 %v100_v45 }
  0x55   :  { %265 = vmatprep.subr.mxu0 %v349_v0 }
  0x58   :  { %266 = vmatpush3.xpose.msra.mxu0 %v99_v48 }
  0x59   :  { %267 = vmatprep.subr.mxu0 %v349_v0 }
  0x5c   :  { %268 = vmatpush3.xpose.msra.mxu0 %v98_v50 }
  0x5f   :  { %270 = vmatmul.mubr.f32.vlgmr.msra.gmra.mxu0 %v115_v51 }
 0x11f   :  { %v182_v53 = vpop.f32.mrf.mxu0 }
 0x120   :  { %v199_v54 = vadd.f32 %v219_v52, %v182_v53 }
 0x121   :  { %v271_v55 = vpop.f32.mrf.mxu0 }
 0x122   :  { %200 = vst [vmem:[#allocation8] sm:$0xff] %v199_v54 }
 0x123   :  { %330 = shalt.err (!%p327_p0)
}
 0x124   :  { %210 = dma.vmem_to_hbm [thread:$0]  %s208_s8, 128, %s458_s5, [#allocation5]  }
 0x125   :  { %343 = dma.done.wait [#allocation5], 128  }
 0x126   :  { %344 = vsyncadd [#allocation5], 4294967168 }
 0x127   :  { %214 = vsyncpa [#allocation4], 1 }
 0x128   :  { %215 = vsyncpa [#allocation7], 1 }
 0x129   :  { %216 = vsyncpa [#allocation5], 1 }

</bundles_post_ra>
